<compile_context>
chip_gen: v7x
topology: tpu7x:2x2x1
jax: 0.10.0
libtpu: 0.0.40
codegen_flags: <defaults>
</compile_context>

<pallas_src>
import functools

import jax
import jax.numpy as jnp
from jax.experimental import pallas as pl
from jax.experimental.pallas import tpu as pltpu

LANE = 128


def encoder_kernel(xy_ref, w1_ref, b1_ref, w2_ref, b2_ref, w3_ref, b3_ref,
                   r_ref, acc_ref, *, n_ctx, has_pad_n):
    """Grid = (batch tiles [parallel], context chunks [arbitrary]).

    xy_ref : (TB, TN, Din_p) bf16   context rows for this (batch, ctx) tile
    w1_ref : (Din_p, Hp) bf16,  w2_ref: (Hp, Hp) bf16,  w3_ref: (Hp, Rp) bf16
    b1/b2  : (1, Hp) f32,       b3: (1, Rp) f32
    r_ref  : (TB, Rp) f32       per-batch mean representation (written on the
                                last context chunk only)
    acc_ref: (TB, Hp) f32       running sum of ReLU(layer-2) over context
    """
    j = pl.program_id(1)
    n_chunks = pl.num_programs(1)

    @pl.when(j == 0)
    def _init():
        acc_ref[...] = jnp.zeros(acc_ref.shape, acc_ref.dtype)

    tb, tn, din = xy_ref.shape
    hp = acc_ref.shape[-1]

    # Flatten (TB, TN) into one MXU M dimension; operands are already bf16.
    xy = xy_ref[...].reshape(tb * tn, din)
    a1 = jnp.dot(xy, w1_ref[...], preferred_element_type=jnp.float32) + b1_ref[...]
    a1 = jnp.maximum(a1, 0.0)

    a2 = jnp.dot(a1.astype(jnp.bfloat16), w2_ref[...],
                 preferred_element_type=jnp.float32) + b2_ref[...]
    a2 = jnp.maximum(a2, 0.0).reshape(tb, tn, hp)

    if has_pad_n:
        # Zero out zero-padded context rows so they don't pollute the mean
        # (they would otherwise contribute ReLU(b-terms) != 0).
        ctx_idx = jax.lax.broadcasted_iota(jnp.int32, (tb, tn, 1), 1) + j * tn
        a2 = jnp.where(ctx_idx < n_ctx, a2, 0.0)

    # Sum over this chunk's context points (sublane/XLU reduction).
    acc_ref[...] += jnp.sum(a2, axis=1)

    @pl.when(j == n_chunks - 1)
    def _finalize():
        # Linearity of layer 3: mean first, then one tiny (TB, Hp)x(Hp, Rp)
        # matmul + bias per batch tile.
        s = (acc_ref[...] * (1.0 / n_ctx)).astype(jnp.bfloat16)
        r_ref[...] = (jnp.dot(s, w3_ref[...], preferred_element_type=jnp.float32)
                      + b3_ref[...])


def _round_up(v, m):
    return ((v + m - 1) // m) * m


def _choose_tiles(B, N, target_rows=4096):
    """Pick (TB, B_pad, TN, N_pad) so each grid step feeds ~target_rows rows.

    Constraints honored:
      * input block (TB, TN, Din_p): TN is a multiple of 8 or equals N_pad.
      * output block (TB, Rp): TB is a multiple of 8 or equals B_pad.
      * B_pad % TB == 0 and N_pad % TN == 0 (no ragged fallback).
    target_rows ~4096 keeps per-step VMEM well under the scoped limit on all
    of v5e / v6e / v7x (v6e could go to 8192 with a larger vmem limit).
    """
    # Context chunking: only chunk when even an 8-row batch tile would blow
    # the per-step row budget.
    if 8 * N <= target_rows:
        TN = N
    else:
        TN = max(8, (target_rows // 8) // 8 * 8)
    N_pad = _round_up(N, TN)

    if B * TN <= target_rows:
        TB = B
        # v7x has 2 TensorCores: give the "parallel" batch axis >= 2 steps
        # when the batch is big enough (neutral on v5e/v6e).
        if B >= 16 and B % 16 == 0:
            TB = B // 2
        B_pad = B
    else:
        TB = max(8, (target_rows // TN) // 8 * 8)
        TB = min(TB, _round_up(B, 8))
        B_pad = _round_up(B, TB)
    return TB, B_pad, TN, N_pad


def encoder_forward(x, y, params, *, target_rows=4096):
    """x: (B, N, x_dim), y: (B, N, y_dim) -> r: (B, r_dim)."""
    B, N, x_dim = x.shape
    y_dim = y.shape[-1]
    w1, b1, w2, b2, w3, b3 = params
    H = w1.shape[1]          # 64
    R = w3.shape[1]          # r_dim

    Din = x_dim + y_dim
    Din_p = _round_up(Din, 8)
    Hp = _round_up(H, LANE)
    Rp = _round_up(R, LANE)

    TB, B_pad, TN, N_pad = _choose_tiles(B, N, target_rows)

    # Wrapper-side layout prep (cheap XLA work, done once):
    #   single concatenated bf16 input, zero-padded features / batch / context.
    xy = jnp.concatenate([x, y], axis=-1).astype(jnp.bfloat16)     # (B, N, Din)
    xy = jnp.pad(xy, ((0, B_pad - B), (0, N_pad - N), (0, Din_p - Din)))

    w1p = jnp.pad(w1.astype(jnp.bfloat16), ((0, Din_p - Din), (0, Hp - H)))
    w2p = jnp.pad(w2.astype(jnp.bfloat16), ((0, Hp - H), (0, Hp - H)))
    w3p = jnp.pad(w3.astype(jnp.bfloat16), ((0, Hp - H), (0, Rp - R)))
    b1p = jnp.pad(b1.astype(jnp.float32), (0, Hp - H)).reshape(1, Hp)
    b2p = jnp.pad(b2.astype(jnp.float32), (0, Hp - H)).reshape(1, Hp)
    b3p = jnp.pad(b3.astype(jnp.float32), (0, Rp - R)).reshape(1, Rp)

    grid = (B_pad // TB, N_pad // TN)
    kernel = functools.partial(encoder_kernel, n_ctx=N, has_pad_n=(N_pad != N))

    out = pl.pallas_call(
        kernel,
        out_shape=jax.ShapeDtypeStruct((B_pad, Rp), jnp.float32),
        grid_spec=pltpu.PrefetchScalarGridSpec(
            num_scalar_prefetch=0,
            grid=grid,
            in_specs=[
                pl.BlockSpec((TB, TN, Din_p), lambda i, j: (i, j, 0)),  # xy
                pl.BlockSpec((Din_p, Hp), lambda i, j: (0, 0)),         # w1
                pl.BlockSpec((1, Hp), lambda i, j: (0, 0)),             # b1
                pl.BlockSpec((Hp, Hp), lambda i, j: (0, 0)),            # w2
                pl.BlockSpec((1, Hp), lambda i, j: (0, 0)),             # b2
                pl.BlockSpec((Hp, Rp), lambda i, j: (0, 0)),            # w3
                pl.BlockSpec((1, Rp), lambda i, j: (0, 0)),             # b3
            ],
            out_specs=pl.BlockSpec((TB, Rp), lambda i, j: (i, 0)),
            scratch_shapes=[pltpu.VMEM((TB, Hp), jnp.float32)],
        ),
        compiler_params=pltpu.CompilerParams(
            dimension_semantics=("parallel", "arbitrary"),
            # Explicit limit: >= v5e's 16 MiB scoped default, safe on v7x's
            # 64 MiB physical VMEM; actual per-step usage is a few MiB.
            vmem_limit_bytes=32 * 1024 * 1024,
        ),
    )(xy, w1p, b1p, w2p, b2p, w3p, b3p)

    # Drop batch / lane zero padding.
    return out[:B, :R]


def init_params(key, x_dim, y_dim, r_dim, hidden=64):
    """Deterministic synthetic parameters (PyTorch Linear-style fan-in scaling)."""
    Din = x_dim + y_dim
    k1, k2, k3, k4, k5, k6 = jax.random.split(key, 6)

    def unif(k, shape, fan_in):
        bound = 1.0 / jnp.sqrt(fan_in)
        return jax.random.uniform(k, shape, jnp.float32, -bound, bound)

    w1 = unif(k1, (Din, hidden), Din)
    b1 = unif(k2, (hidden,), Din)
    w2 = unif(k3, (hidden, hidden), hidden)
    b2 = unif(k4, (hidden,), hidden)
    w3 = unif(k5, (hidden, r_dim), hidden)
    b3 = unif(k6, (r_dim,), hidden)
    return (w1, b1, w2, b2, w3, b3)


def encoder_ref_f32(x, y, params):
    """Pure-f32 JAX reference (matches the PyTorch module)."""
    w1, b1, w2, b2, w3, b3 = params
    h = jnp.concatenate([x, y], axis=-1).astype(jnp.float32)
    h = jnp.maximum(jnp.dot(h, w1) + b1, 0.0)
    h = jnp.maximum(jnp.dot(h, w2) + b2, 0.0)
    h = jnp.dot(h, w3) + b3
    return h.mean(axis=1)


def encoder_ref_kernel_precision(x, y, params):
    """Reference mirroring the kernel math: bf16 MXU operands, f32 accumulate,
    context mean taken before the last matmul."""
    w1, b1, w2, b2, w3, b3 = params
    h = jnp.concatenate([x, y], axis=-1).astype(jnp.bfloat16)
    a1 = jnp.maximum(
        jnp.dot(h, w1.astype(jnp.bfloat16), preferred_element_type=jnp.float32)
        + b1, 0.0)
    a2 = jnp.maximum(
        jnp.dot(a1.astype(jnp.bfloat16), w2.astype(jnp.bfloat16),
                preferred_element_type=jnp.float32) + b2, 0.0)
    s = a2.mean(axis=1).astype(jnp.bfloat16)
    return jnp.dot(s, w3.astype(jnp.bfloat16),
                   preferred_element_type=jnp.float32) + b3


if __name__ == "__main__":
    # Small shapes consistent with the module's forward:
    #   x: (batch, num_context, x_dim), y: (batch, num_context, y_dim)
    B, N, x_dim, y_dim, r_dim = 2, 8, 3, 2, 32

    key = jax.random.PRNGKey(0)
    kx, ky, kp = jax.random.split(key, 3)
    x = jax.random.normal(kx, (B, N, x_dim), jnp.float32)
    y = jax.random.normal(ky, (B, N, y_dim), jnp.float32)
    params = init_params(kp, x_dim, y_dim, r_dim)

    fwd = jax.jit(encoder_forward)
    r = jax.block_until_ready(fwd(x, y, params))
    assert r.shape == (B, r_dim)

    # Tight check vs. a reference using the kernel's exact precision/ordering,
    # loose check vs. the pure-f32 reference (bf16 rounding only).
    r_bf16 = encoder_ref_kernel_precision(x, y, params)
    r_f32 = encoder_ref_f32(x, y, params)
    assert jnp.allclose(r, r_bf16, atol=1e-4, rtol=1e-4), "mismatch vs bf16 reference"
    assert jnp.allclose(r, r_f32, atol=5e-2, rtol=5e-2), "mismatch vs f32 reference"

    print("KERNEL_OK")
</pallas_src>

<mosaic_0001>
module attributes {stable_mosaic.version = 11 : i64} {
  func.func @encoder_kernel(%arg0: i32, %arg1: i32, %arg2: memref<2x8x8xbf16, #tpu.memory_space<vmem>>, %arg3: memref<8x128xbf16, #tpu.memory_space<vmem>>, %arg4: memref<1x128xf32, #tpu.memory_space<vmem>>, %arg5: memref<128x128xbf16, #tpu.memory_space<vmem>>, %arg6: memref<1x128xf32, #tpu.memory_space<vmem>>, %arg7: memref<128x128xbf16, #tpu.memory_space<vmem>>, %arg8: memref<1x128xf32, #tpu.memory_space<vmem>>, %arg9: memref<2x128xf32, #tpu.memory_space<vmem>>, %arg10: memref<2x128xf32, #tpu.memory_space<vmem>>) attributes {dimension_semantics = [#tpu.dimension_semantics<parallel>, #tpu.dimension_semantics<arbitrary>], iteration_bounds = array<i64: 1, 1>, scalar_prefetch = 0 : i64, scratch_operands = 1 : i64, tpu.core_type = #tpu.core_type<tc>, window_params = [{transform_indices = @transform_0, window_bounds = array<i64: 2, 8, 8>}, {pipeline_mode = #tpu.pipeline_mode<synchronous>, transform_indices = @transform_1, window_bounds = array<i64: 8, 128>}, {pipeline_mode = #tpu.pipeline_mode<synchronous>, transform_indices = @transform_2, window_bounds = array<i64: 1, 128>}, {pipeline_mode = #tpu.pipeline_mode<synchronous>, transform_indices = @transform_3, window_bounds = array<i64: 128, 128>}, {pipeline_mode = #tpu.pipeline_mode<synchronous>, transform_indices = @transform_4, window_bounds = array<i64: 1, 128>}, {pipeline_mode = #tpu.pipeline_mode<synchronous>, transform_indices = @transform_5, window_bounds = array<i64: 128, 128>}, {pipeline_mode = #tpu.pipeline_mode<synchronous>, transform_indices = @transform_6, window_bounds = array<i64: 1, 128>}, {transform_indices = @transform_7, window_bounds = array<i64: 2, 128>}]} {
    %c0_i32 = arith.constant 0 : i32
    %0 = arith.cmpi eq, %arg1, %c0_i32 : i32
    %1 = arith.extui %0 : i1 to i32
    %c0_i32_0 = arith.constant 0 : i32
    %2 = arith.cmpi ne, %1, %c0_i32_0 : i32
    scf.if %2 {
      %cst_21 = arith.constant 0.000000e+00 : f32
      %28 = vector.broadcast %cst_21 : f32 to vector<2x128xf32>
      %c0_22 = arith.constant 0 : index
      %c0_23 = arith.constant 0 : index
      %29 = vector.load %arg10[%c0_22, %c0_23] : memref<2x128xf32, #tpu.memory_space<vmem>>, vector<2x128xf32>
      tpu.vector_store %arg10[%c0_22, %c0_23], %28 {strides = array<i32>} : memref<2x128xf32, #tpu.memory_space<vmem>>, vector<2x128xf32>,
    } else {
    }
    %c0 = arith.constant 0 : index
    %c0_1 = arith.constant 0 : index
    %c0_2 = arith.constant 0 : index
    %3 = vector.load %arg2[%c0, %c0_1, %c0_2] : memref<2x8x8xbf16, #tpu.memory_space<vmem>>, vector<2x8x8xbf16>
    %4 = vector.shape_cast %3 : vector<2x8x8xbf16> to vector<16x8xbf16>
    %c0_3 = arith.constant 0 : index
    %c0_4 = arith.constant 0 : index
    %5 = vector.load %arg3[%c0_3, %c0_4] : memref<8x128xbf16, #tpu.memory_space<vmem>>, vector<8x128xbf16>
    %cst = arith.constant dense<0.000000e+00> : vector<16x128xf32>
    %6 = tpu.matmul %4, %5, %cst {dimension_numbers = #tpu.dot_dimension_numbers<[1], [0], [0], [1], [0, 0, 1, 1], [], []>} : vector<16x8xbf16>, vector<8x128xbf16>, vector<16x128xf32> -> vector<16x128xf32>
    %c0_5 = arith.constant 0 : index
    %c0_6 = arith.constant 0 : index
    %7 = vector.load %arg4[%c0_5, %c0_6] : memref<1x128xf32, #tpu.memory_space<vmem>>, vector<1x128xf32>
    %8 = vector.broadcast %7 : vector<1x128xf32> to vector<16x128xf32>
    %9 = arith.addf %6, %8 : vector<16x128xf32>
    %cst_7 = arith.constant 0.000000e+00 : f32
    %10 = vector.broadcast %cst_7 : f32 to vector<16x128xf32>
    %11 = arith.maximumf %9, %10 : vector<16x128xf32>
    %12 = arith.truncf %11 : vector<16x128xf32> to vector<16x128xbf16>
    %c0_8 = arith.constant 0 : index
    %c0_9 = arith.constant 0 : index
    %13 = vector.load %arg5[%c0_8, %c0_9] : memref<128x128xbf16, #tpu.memory_space<vmem>>, vector<128x128xbf16>
    %cst_10 = arith.constant dense<0.000000e+00> : vector<16x128xf32>
    %14 = tpu.matmul %12, %13, %cst_10 {dimension_numbers = #tpu.dot_dimension_numbers<[1], [0], [0], [1], [0, 0, 1, 1], [], []>} : vector<16x128xbf16>, vector<128x128xbf16>, vector<16x128xf32> -> vector<16x128xf32>
    %c0_11 = arith.constant 0 : index
    %c0_12 = arith.constant 0 : index
    %15 = vector.load %arg6[%c0_11, %c0_12] : memref<1x128xf32, #tpu.memory_space<vmem>>, vector<1x128xf32>
    %16 = vector.broadcast %15 : vector<1x128xf32> to vector<16x128xf32>
    %17 = arith.addf %14, %16 : vector<16x128xf32>
    %cst_13 = arith.constant 0.000000e+00 : f32
    %18 = vector.broadcast %cst_13 : f32 to vector<16x128xf32>
    %19 = arith.maximumf %17, %18 : vector<16x128xf32>
    %20 = vector.shape_cast %19 : vector<16x128xf32> to vector<2x8x128xf32>
    %c0_14 = arith.constant 0 : index
    %c0_15 = arith.constant 0 : index
    %21 = vector.load %arg10[%c0_14, %c0_15] : memref<2x128xf32, #tpu.memory_space<vmem>>, vector<2x128xf32>
    %cst_16 = arith.constant dense<0.000000e+00> : vector<2x128xf32>
    %22 = vector.multi_reduction <add>, %20, %cst_16 [1] : vector<2x8x128xf32> to vector<2x128xf32>
    %23 = arith.addf %21, %22 : vector<2x128xf32>
    %c0_17 = arith.constant 0 : index
    %c0_18 = arith.constant 0 : index
    %24 = vector.load %arg10[%c0_17, %c0_18] : memref<2x128xf32, #tpu.memory_space<vmem>>, vector<2x128xf32>
    tpu.vector_store %arg10[%c0_17, %c0_18], %23 {strides = array<i32>} : memref<2x128xf32, #tpu.memory_space<vmem>>, vector<2x128xf32>,
    %c0_i32_19 = arith.constant 0 : i32
    %25 = arith.cmpi eq, %arg1, %c0_i32_19 : i32
    %26 = arith.extui %25 : i1 to i32
    %c0_i32_20 = arith.constant 0 : i32
    %27 = arith.cmpi ne, %26, %c0_i32_20 : i32
    scf.if %27 {
      %c0_21 = arith.constant 0 : index
      %c0_22 = arith.constant 0 : index
      %28 = vector.load %arg10[%c0_21, %c0_22] : memref<2x128xf32, #tpu.memory_space<vmem>>, vector<2x128xf32>
      %cst_23 = arith.constant 1.250000e-01 : f32
      %29 = vector.broadcast %cst_23 : f32 to vector<2x128xf32>
      %30 = arith.mulf %28, %29 : vector<2x128xf32>
      %31 = arith.truncf %30 : vector<2x128xf32> to vector<2x128xbf16>
      %c0_24 = arith.constant 0 : index
      %c0_25 = arith.constant 0 : index
      %32 = vector.load %arg7[%c0_24, %c0_25] : memref<128x128xbf16, #tpu.memory_space<vmem>>, vector<128x128xbf16>
      %cst_26 = arith.constant dense<0.000000e+00> : vector<2x128xf32>
      %33 = tpu.matmul %31, %32, %cst_26 {dimension_numbers = #tpu.dot_dimension_numbers<[1], [0], [0], [1], [0, 0, 1, 1], [], []>} : vector<2x128xbf16>, vector<128x128xbf16>, vector<2x128xf32> -> vector<2x128xf32>
      %c0_27 = arith.constant 0 : index
      %c0_28 = arith.constant 0 : index
      %34 = vector.load %arg8[%c0_27, %c0_28] : memref<1x128xf32, #tpu.memory_space<vmem>>, vector<1x128xf32>
      %35 = vector.broadcast %34 : vector<1x128xf32> to vector<2x128xf32>
      %36 = arith.addf %33, %35 : vector<2x128xf32>
      %c0_29 = arith.constant 0 : index
      %c0_30 = arith.constant 0 : index
      %37 = vector.load %arg9[%c0_29, %c0_30] : memref<2x128xf32, #tpu.memory_space<vmem>>, vector<2x128xf32>
      tpu.vector_store %arg9[%c0_29, %c0_30], %36 {strides = array<i32>} : memref<2x128xf32, #tpu.memory_space<vmem>>, vector<2x128xf32>,
    } else {
    }
    return
  }
  func.func @transform_0(%arg0: i32, %arg1: i32) -> (i32, i32, i32) {
    %c0_i32 = arith.constant 0 : i32
    %c0_i32_0 = arith.constant 0 : i32
    return %arg0, %arg1, %c0_i32 : i32, i32, i32
  }
  func.func @transform_1(%arg0: i32, %arg1: i32) -> (i32, i32) {
    %c0_i32 = arith.constant 0 : i32
    %c0_i32_0 = arith.constant 0 : i32
    %c0_i32_1 = arith.constant 0 : i32
    return %c0_i32, %c0_i32_0 : i32, i32
  }
  func.func @transform_2(%arg0: i32, %arg1: i32) -> (i32, i32) {
    %c0_i32 = arith.constant 0 : i32
    %c0_i32_0 = arith.constant 0 : i32
    %c0_i32_1 = arith.constant 0 : i32
    return %c0_i32, %c0_i32_0 : i32, i32
  }
  func.func @transform_3(%arg0: i32, %arg1: i32) -> (i32, i32) {
    %c0_i32 = arith.constant 0 : i32
    %c0_i32_0 = arith.constant 0 : i32
    %c0_i32_1 = arith.constant 0 : i32
    return %c0_i32, %c0_i32_0 : i32, i32
  }
  func.func @transform_4(%arg0: i32, %arg1: i32) -> (i32, i32) {
    %c0_i32 = arith.constant 0 : i32
    %c0_i32_0 = arith.constant 0 : i32
    %c0_i32_1 = arith.constant 0 : i32
    return %c0_i32, %c0_i32_0 : i32, i32
  }
  func.func @transform_5(%arg0: i32, %arg1: i32) -> (i32, i32) {
    %c0_i32 = arith.constant 0 : i32
    %c0_i32_0 = arith.constant 0 : i32
    %c0_i32_1 = arith.constant 0 : i32
    return %c0_i32, %c0_i32_0 : i32, i32
  }
  func.func @transform_6(%arg0: i32, %arg1: i32) -> (i32, i32) {
    %c0_i32 = arith.constant 0 : i32
    %c0_i32_0 = arith.constant 0 : i32
    %c0_i32_1 = arith.constant 0 : i32
    return %c0_i32, %c0_i32_0 : i32, i32
  }
  func.func @transform_7(%arg0: i32, %arg1: i32) -> (i32, i32) {
    %c0_i32 = arith.constant 0 : i32
    %c0_i32_0 = arith.constant 0 : i32
    return %arg0, %c0_i32 : i32, i32
  }
}

</mosaic_0001>

<bundles_post_ra>
// kernel: encoder_forward.1
= control target key start
LH: loop header
LB: loop body
LE: loop exit
PB: predicated region body
PF: predicated region fallthrough
CT: control target
= control target key end

     0   :  { %vm52_vm0 = vcmask 1043456   ;;  %v497_v1 = vmov 0.0   ;;  %vm498_vm1 = vmmov 0   ;;  %vm48_vm2 = vcmask 64512   ;;  %s636_s0 = inlined_call_operand.vmem [shape: bf16[2,8,8], index: 0, kind: input, shape index: {}]   ;;  %s637_s1 = inlined_call_operand.vmem [shape: bf16[8,128], index: 1, kind: input, shape index: {}]   ;;  %s638_s2 = inlined_call_operand.vmem [shape: f32[1,128], index: 2, kind: input, shape index: {}]   ;;  %s639_s3 = inlined_call_operand.vmem [shape: bf16[128,128], index: 3, kind: input, shape index: {}]   ;;  %s640_s4 = inlined_call_operand.vmem [shape: f32[1,128], index: 4, kind: input, shape index: {}]   ;;  %s641_s5 = inlined_call_operand.vmem [shape: bf16[128,128], index: 5, kind: input, shape index: {}]   ;;  %s642_s6 = inlined_call_operand.vmem [shape: f32[1,128], index: 6, kind: input, shape index: {}]   ;;  %s643_s7 = inlined_call_operand.hbm [shape: f32[2,128], index: 7, kind: output, shape index: {}]  }
   0x1   :  { %v35_v0 = vld [vmem:[%s637_s1] sm:$0xf]  ;;  %407 = vmatprep.subr.bf16.mxu0 %v497_v1  ;;  %32 = vst [vmem:[#allocation2] sm:$0x3] %v497_v1  ;;  %409 = vmatprep.mubr.msk.bf16.mxu0 %vm498_vm1, %v497_v1  ;;  %v458_v5 = vld [vmem:[%s639_s3 + $0x8] sm:$0xff]   ;;  %v459_v6 = vld [vmem:[%s639_s3 + $0x10] sm:$0xff]  }
   0x2   :  { %v54_v2 = vsel %vm52_vm0, %v35_v0, 0  ;;  %v456_v3 = vld [vmem:[%s636_s0] sm:$0xff]   ;;  %413 = vmatprep.subr.bf16.mxu1 %v497_v1  ;;  %429 = vmatprep.mubr.msk.bf16.mxu1 %vm498_vm1, %v497_v1  ;;  %v460_v7 = vld [vmem:[%s639_s3 + $0x18] sm:$0xff]  }
   0x3   :  { %408 = vmatpush3.bf16.msra.mxu0 %v54_v2  ;;  %v457_v4 = vld [vmem:[%s639_s3] sm:$0xff]  }
   0x4   :  { %433 = vmatprep.subr.bf16.mxu0 %v497_v1  ;;  %414 = vmatpush3.bf16.msra.mxu1 %v457_v4 }
   0x5   :  { %415 = vmatprep.subr.bf16.mxu1 %v497_v1 }
   0x6   :  { %410 = vmatmul.mubr.msk.bf16.vlgmr.msra.gmra.mrb[0].mxu0 %vm48_vm2, %v456_v3 }
   0x7   :  { %449 = vmatprep.mubr.msk.bf16.mxu0 %vm498_vm1, %v497_v1 }
   0x8   :  { %416 = vmatpush3.bf16.msra.mxu1 %v458_v5 }
   0x9   :  { %417 = vmatprep.subr.bf16.mxu1 %v497_v1 }
   0xc   :  { %418 = vmatpush3.bf16.msra.mxu1 %v459_v6 }
   0xd   :  { %419 = vmatprep.subr.bf16.mxu1 %v497_v1 }
   0xe   :  { %12 = vsyncpa [#allocation4], 0  ;;  %v461_v8 = vld [vmem:[%s639_s3 + $0x20] sm:$0xff]   ;;  %v462_v9 = vld [vmem:[%s639_s3 + $0x28] sm:$0xff]   ;;  %vm229_vm3 = vcmask 1041409   ;;  %s499_s12 = smov [#allocation3]  }
   0xf   :  { %v463_v10 = vld [vmem:[%s639_s3 + $0x30] sm:$0xff]   ;;  %v464_v11 = vld [vmem:[%s639_s3 + $0x38] sm:$0xff]   ;;  %v366_v12 = vld [vmem:[%s638_s2] ss:$0 sm:$0xff]  ;;  %s358_s13 = sshll.u32 %s499_s12, 4  ;;  %s359_s13 = int_to_ptr.vmem [resolvable:$true] %s358_s13 }
  0x10   :  { %420 = vmatpush3.bf16.msra.mxu1 %v460_v7  ;;  %v465_v22 = vld [vmem:[%s641_s5] sm:$0xff]   ;;  %v466_v23 = vld [vmem:[%s641_s5 + $0x8] sm:$0xff]   ;;  %v467_v24 = vld [vmem:[%s641_s5 + $0x10] sm:$0xff]   ;;  %s473_s14 = scalar_lea.vmem %s359_s13, 32  ;;  %p478_p1 = scmp.lt.s32.totalorder %s359_s13, %s359_s13 }
  0x11   :  { %421 = vmatprep.subr.bf16.mxu1 %v497_v1  ;;  %434 = vmatpush3.bf16.msra.mxu0 %v465_v22  ;;  %v468_v25 = vld [vmem:[%s641_s5 + $0x18] sm:$0xff]   ;;  %v469_v26 = vld [vmem:[%s641_s5 + $0x20] sm:$0xff]   ;;  %v470_v27 = vld [vmem:[%s641_s5 + $0x28] sm:$0xff]   ;;  %p474_p0 = scmp.ne.s32.totalorder %s359_s13, %s473_s14  ;;  %p479_p2 = scmp.lt.s32.totalorder %s473_s14, %s473_s14 }
  0x12   :  { %435 = vmatprep.subr.bf16.mxu0 %v497_v1  ;;  %v471_v28 = vld [vmem:[%s641_s5 + $0x30] sm:$0xff]   ;;  %v472_v29 = vld [vmem:[%s641_s5 + $0x38] sm:$0xff]   ;;  %v369_v30 = vld [vmem:[%s640_s4] ss:$0 sm:$0xff] }
  0x13   :  { %v214_v50 = vld [vmem:[#allocation2] sm:$0x3]  ;;  %p480_p3 = por %p479_p2, %p478_p1 }
  0x14   :  { %422 = vmatpush3.bf16.msra.mxu1 %v461_v8  ;;  %v378_v57 = vld [vmem:[%s642_s6] ss:$0 sm:$0xff] }
  0x15   :  { %423 = vmatprep.subr.bf16.mxu1 %v497_v1  ;;  %436 = vmatpush3.bf16.msra.mxu0 %v466_v23  ;;  %p481_p4 = pnand %p480_p3, %p474_p0 }
  0x16   :  { %437 = vmatprep.subr.bf16.mxu0 %v497_v1 }
  0x18   :  { %424 = vmatpush3.bf16.msra.mxu1 %v462_v9 }
  0x19   :  { %425 = vmatprep.subr.bf16.mxu1 %v497_v1  ;;  %438 = vmatpush3.bf16.msra.mxu0 %v467_v24 }
  0x1a   :  { %439 = vmatprep.subr.bf16.mxu0 %v497_v1 }
  0x1c   :  { %426 = vmatpush3.bf16.msra.mxu1 %v463_v10 }
  0x1d   :  { %427 = vmatprep.subr.bf16.mxu1 %v497_v1  ;;  %440 = vmatpush3.bf16.msra.mxu0 %v468_v25 }
  0x1e   :  { %441 = vmatprep.subr.bf16.mxu0 %v497_v1 }
  0x20   :  { %428 = vmatpush3.bf16.msra.mxu1 %v464_v11 }
  0x21   :  { %442 = vmatpush3.bf16.msra.mxu0 %v469_v26 }
  0x22   :  { %443 = vmatprep.subr.bf16.mxu0 %v497_v1 }
  0x25   :  { %444 = vmatpush3.bf16.msra.mxu0 %v470_v27 }
  0x26   :  { %445 = vmatprep.subr.bf16.mxu0 %v497_v1 }
  0x29   :  { %446 = vmatpush3.bf16.msra.mxu0 %v471_v28 }
  0x2a   :  { %447 = vmatprep.subr.bf16.mxu0 %v497_v1 }
  0x2d   :  { %448 = vmatpush3.bf16.msra.mxu0 %v472_v29 }
  0xd9   :  { %v90_v13 = vpop.f32.mrb[0].mxu0 }
  0xda   :  { %v91_v14 = vadd.f32 %v366_v12, %v90_v13  ;;  %v411_v15 = vpop.f32.mrb[1].mxu0 }
  0xdb   :  { %v93_v16 = vpop.f32.mrb[2].mxu0 }
  0xdc   :  { %v94_v17 = vadd.f32 %v366_v12, %v93_v16  ;;  %v412_v18 = vpop.f32.mrb[3].mxu0  ;;  %v97_v19 = vmax.f32 %v91_v14, 0.0 }
  0xde   :  { %v98_v20 = vmax.f32 %v94_v17, 0.0 }
  0xe0   :  { %v99_v21 = vpack.c.bf16 %v98_v20, %v97_v19 }
  0xe2   :  { %430 = vmatmul.mubr.bf16.vlgmr.msra.gmra.mrb[0].mxu1 %v99_v21 }
 0x1b5   :  { %v205_v31 = vpop.f32.mrb[0].mxu1 }
 0x1b6   :  { %v206_v32 = vadd.f32 %v369_v30, %v205_v31  ;;  %v431_v33 = vpop.f32.mrb[1].mxu1 }
 0x1b7   :  { %v208_v34 = vpop.f32.mrb[2].mxu1 }
 0x1b8   :  { %v212_v35 = vmax.f32 %v206_v32, 0.0  ;;  %v209_v36 = vadd.f32 %v369_v30, %v208_v34  ;;  %v432_v37 = vpop.f32.mrb[3].mxu1 }
 0x1ba   :  { %v215_v38 = vrot.slane %v212_v35, 4  ;;  %v213_v39 = vmax.f32 %v209_v36, 0.0 }
 0x1bc   :  { %v216_v40 = vadd.f32 %v215_v38, %v212_v35  ;;  %v221_v41 = vrot.slane %v213_v39, 4 }
 0x1be   :  { %v217_v42 = vrot.slane %v216_v40, 2  ;;  %v222_v43 = vadd.f32 %v221_v41, %v213_v39 }
 0x1c0   :  { %v218_v44 = vadd.f32 %v217_v42, %v216_v40  ;;  %v223_v45 = vrot.slane %v222_v43, 2 }
 0x1c2   :  { %v219_v46 = vrot.slane %v218_v44, 1  ;;  %v224_v47 = vadd.f32 %v223_v45, %v222_v43 }
 0x1c4   :  { %v225_v48 = vrot.slane %v224_v47, 1  ;;  %v220_v49 = vadd.f32 %v219_v46, %v218_v44 }
 0x1c6   :  { %v226_v51 = vadd.f32 %v225_v48, %v224_v47 }
 0x1c8   :  { %v230_v52 = vsel %vm229_vm3, %v226_v51, %v220_v49 }
 0x1c9   :  { %v232_v53 = vadd.f32 %v230_v52, %v214_v50 }
 0x1cb   :  { %233 = vst [vmem:[#allocation2] sm:$0x3] %v232_v53 }
 0x1d2   :  { %v237_v54 = vld [vmem:[#allocation2] sm:$0x3] }
 0x1d3   :  { %v238_v55 = vmul.f32 0.125, %v237_v54 }
 0x1d5   :  { %v239_v56 = vpack.c.bf16 %v238_v55, %v238_v55 }
 0x1d7   :  { %450 = vmatmul.mubr.bf16.vlgmr.msra.gmra.mrb[4].mxu0 %v239_v56 }
 0x2aa   :  { %v345_v58 = vpop.f32.mrb[4].mxu0 }
 0x2ab   :  { %v346_v59 = vadd.f32 %v378_v57, %v345_v58  ;;  %v451_v60 = vpop.f32.mrb[5].mxu0 }
 0x2ac   :  { %v348_v61 = vpop.f32.mrb[6].mxu0 }
 0x2ad   :  { %351 = vst [vmem:[#allocation3] sm:$0x3] %v346_v59  ;;  %v452_v62 = vpop.f32.mrb[7].mxu0 }
 0x2ae   :  { %484 = shalt.err (!%p481_p4)
}
 0x2af   :  { %s485_s6 = scalar_lea.hbm %s643_s7, 32 }
 0x2b0   :  { %p486_p5 = scmp.ne.s32.totalorder %s643_s7, %s485_s6  ;;  %p489_p6 = scmp.lt.u32.totalorder %s485_s6, %s643_s7 }
 0x2b2   :  { %p491_p7 = pnand %p489_p6, %p486_p5 }
 0x2b4   :  { %494 = shalt.err (!%p491_p7)
}
 0x2b5   :  { %361 = dma.vmem_to_hbm [thread:$0]  %s359_s13, 32, %s643_s7, [#allocation4]  }
 0x2b6   :  { %495 = dma.done.wait [#allocation4], 32  }
 0x2b7   :  { %496 = vsyncadd [#allocation4], 4294967264 }
 0x2b8   :  { %365 = vsyncpa [#allocation4], 1 }

</bundles_post_ra>
